<compile_context>
chip_gen: v5e
topology: v5e:2x2
jax: 0.10.0
libtpu: 0.0.40
codegen_flags: <defaults>
</compile_context>

<pallas_src>
import functools

import jax
import jax.numpy as jnp
from jax.experimental import pallas as pl
from jax.experimental.pallas import tpu as pltpu

EPS = 1e-5                       # nn.InstanceNorm1d default eps
BLOCK_TARGET_BYTES = 2 << 20     # ~2 MiB blocks: >=85% of HBM roofline, fits
                                 # default scoped VMEM on v5e/v6e/v7x
RESIDENT_MAX_BYTES = 6 << 20     # largest resident (rows, T) block allowed
                                 # (4x buffers + f32 temps < v7x 64 MiB VMEM)


# ----------------------------------------------------------------------------
# Kernels
# ----------------------------------------------------------------------------
def _resident_kernel(x_ref, o_ref, *, eps):
    """One-read path: the whole (row_block, T) slab is VMEM resident.

    Variance is computed about the mean (no catastrophic cancellation).
    Garbage rows in a ragged last row-block only affect their own (clipped)
    output rows, since every op here is row-independent.
    """
    x = x_ref[...].astype(jnp.float32)                    # (rows, T)
    mean = jnp.mean(x, axis=-1, keepdims=True)
    xc = x - mean
    var = jnp.mean(xc * xc, axis=-1, keepdims=True)
    rstd = jax.lax.rsqrt(var + jnp.float32(eps))
    o_ref[...] = (xc * rstd).astype(o_ref.dtype)


def _tiled_kernel(x_ref, o_ref, sum_ref, sq_ref, *, t_true, t_blk, eps):
    """Fallback two-pass path for T too long to be VMEM resident.

    grid = (row_blocks, 2, t_blocks); pass axis p = program_id(1):
      p == 0: accumulate per-row sum / sum-of-squares (ragged tail masked).
      p == 1: at t == 0 fold the moments into scale/shift (hoisted epilogue,
              scratch reused), then normalize every tile as x*scale + shift.
    """
    p = pl.program_id(1)
    t = pl.program_id(2)

    @pl.when(jnp.logical_and(p == 0, t == 0))
    def _():
        sum_ref[...] = jnp.zeros_like(sum_ref)
        sq_ref[...] = jnp.zeros_like(sq_ref)

    x = x_ref[...].astype(jnp.float32)                    # (rows, t_blk)

    @pl.when(p == 0)
    def _():
        # Lanes at global position >= t_true (ragged last tile) contribute 0.
        lane = jax.lax.broadcasted_iota(jnp.int32, x.shape, 1) + t * t_blk
        xm = jnp.where(lane < t_true, x, 0.0)
        sum_ref[...] += jnp.sum(xm, axis=-1, keepdims=True)
        sq_ref[...] += jnp.sum(xm * xm, axis=-1, keepdims=True)

    @pl.when(jnp.logical_and(p == 1, t == 0))
    def _():
        inv_n = jnp.float32(1.0 / t_true)
        mean = sum_ref[...] * inv_n
        # TODO(synk): E[x^2]-mean^2 loses precision when |mean| >> std; a
        # centered second pass / Welford combine would fix it at the cost of
        # extra HBM traffic on this (rare, very-long-T) path.
        var = jnp.maximum(sq_ref[...] * inv_n - mean * mean, 0.0)
        rstd = jax.lax.rsqrt(var + jnp.float32(eps))
        sum_ref[...] = rstd                               # reuse: scale
        sq_ref[...] = -mean * rstd                        # reuse: shift

    @pl.when(p == 1)
    def _():
        o_ref[...] = (x * sum_ref[...] + sq_ref[...]).astype(o_ref.dtype)


# ----------------------------------------------------------------------------
# Wrapper
# ----------------------------------------------------------------------------
def _vmem_limit(block_bytes):
    # in + out double-buffered (4x block) + f32 compute temporaries.  Only
    # raise the scoped-VMEM cap when the default could be tight; cap well
    # inside v7x's 64 MiB physical VMEM.
    need = 6 * block_bytes + (2 << 20)
    if need <= (14 << 20):
        return None
    return min(need, 48 << 20)


def instance_norm1d(x, *, eps=EPS,
                    block_target_bytes=BLOCK_TARGET_BYTES,
                    resident_max_bytes=RESIDENT_MAX_BYTES):
    """nn.InstanceNorm1d(num_features, eps=1e-5, affine=False) forward.

    Accepts (N, C, T) or unbatched (C, T); returns same shape and dtype.
    """
    squeeze = x.ndim == 2
    if squeeze:
        x = x[None]
    N, C, T = x.shape
    dtype = x.dtype
    itemsize = jnp.dtype(dtype).itemsize
    R = N * C
    x2 = x.reshape(R, T)              # contiguous reshape: no data movement

    min_rows = R if R < 8 else 8      # smallest legal row block
    row_bytes = T * itemsize

    if min_rows * row_bytes <= resident_max_bytes:
        # ------------------ resident (one-HBM-read) path ------------------
        rows_target = max(min_rows, block_target_bytes // max(row_bytes, 1))
        if rows_target >= R:
            row_block = R             # full extent (any R allowed)
        else:
            row_block = max(8, (rows_target // 8) * 8)
        n_r = pl.cdiv(R, row_block)
        block_bytes = row_block * T * itemsize
        cost = pl.CostEstimate(flops=6 * R * T, transcendentals=R,
                               bytes_accessed=2 * R * T * itemsize)
        out2 = pl.pallas_call(
            functools.partial(_resident_kernel, eps=eps),
            out_shape=jax.ShapeDtypeStruct((R, T), dtype),
            grid=(n_r,),
            in_specs=[pl.BlockSpec((row_block, T), lambda r: (r, 0))],
            out_specs=pl.BlockSpec((row_block, T), lambda r: (r, 0)),
            compiler_params=pltpu.CompilerParams(
                dimension_semantics=("parallel",),
                vmem_limit_bytes=_vmem_limit(block_bytes)),
            cost_estimate=cost,
        )(x2)
    else:
        # --------------- tiled two-pass path (very long T) ----------------
        row_block = min_rows
        t_blk = block_target_bytes // max(row_block * itemsize, 1)
        t_blk = max(128, (t_blk // 128) * 128)            # lane-dense tiles
        n_r = pl.cdiv(R, row_block)
        n_t = pl.cdiv(T, t_blk)
        block_bytes = row_block * t_blk * itemsize
        cost = pl.CostEstimate(flops=7 * R * T, transcendentals=R,
                               bytes_accessed=3 * R * T * itemsize)
        out2 = pl.pallas_call(
            functools.partial(_tiled_kernel, t_true=T, t_blk=t_blk, eps=eps),
            out_shape=jax.ShapeDtypeStruct((R, T), dtype),
            grid=(n_r, 2, n_t),
            in_specs=[pl.BlockSpec((row_block, t_blk),
                                   lambda r, p, t: (r, t))],
            # During the stats pass (p == 0) the output window is parked on
            # block (r, 0); it is never written there and the block index does
            # not change until (p == 1, t == 0) fully overwrites it, so each
            # output block is written exactly once before its writeback.
            out_specs=pl.BlockSpec((row_block, t_blk),
                                   lambda r, p, t: (r, t * p)),
            scratch_shapes=[
                pltpu.VMEM((row_block, 1), jnp.float32),  # sum -> scale
                pltpu.VMEM((row_block, 1), jnp.float32),  # sumsq -> shift
            ],
            compiler_params=pltpu.CompilerParams(
                dimension_semantics=("parallel", "arbitrary", "arbitrary"),
                vmem_limit_bytes=_vmem_limit(block_bytes)),
            cost_estimate=cost,
        )(x2)

    out = out2.reshape(N, C, T)
    if squeeze:
        out = out[0]
    return out


# ----------------------------------------------------------------------------
# Self-test
# ----------------------------------------------------------------------------
def _instance_norm_ref(x, eps=EPS):
    m = jnp.mean(x, axis=-1, keepdims=True)
    v = jnp.mean((x - m) ** 2, axis=-1, keepdims=True)
    return (x - m) * jax.lax.rsqrt(v + eps)


if __name__ == "__main__":
    key = jax.random.PRNGKey(0)
    k1, k2, k3 = jax.random.split(key, 3)

    # (N=2, C=3, T=16): R=6 < 8 -> full-extent row block, resident path.
    x_a = jax.random.normal(k1, (2, 3, 16), jnp.float32) * 2.0 + 0.5
    # bf16 I/O stays bf16 end-to-end (no wrapper upcast), resident path.
    x_b = (jax.random.normal(k2, (2, 4, 64), jnp.float32) * 3.0 - 1.0
           ).astype(jnp.bfloat16)
    # Small array forced onto the time-tiled two-pass path: ragged row block
    # (R=10) and ragged last time tile (T=300, t_blk=128).
    x_c = jax.random.normal(k3, (2, 5, 300), jnp.float32) + 4.0

    fn = jax.jit(instance_norm1d)
    forced_tiled = jax.jit(functools.partial(
        instance_norm1d, block_target_bytes=4096, resident_max_bytes=1024))

    y_a = jax.block_until_ready(fn(x_a))
    y_b = jax.block_until_ready(fn(x_b))
    y_c = jax.block_until_ready(forced_tiled(x_c))

    assert y_a.shape == x_a.shape and y_a.dtype == x_a.dtype
    assert y_b.shape == x_b.shape and y_b.dtype == x_b.dtype
    assert y_c.shape == x_c.shape and y_c.dtype == x_c.dtype
    assert bool(jnp.all(jnp.isfinite(y_a)))
    assert bool(jnp.all(jnp.isfinite(y_c)))

    ref_a = _instance_norm_ref(x_a)
    ref_b = _instance_norm_ref(x_b.astype(jnp.float32))
    ref_c = _instance_norm_ref(x_c)
    assert bool(jnp.allclose(y_a, ref_a, atol=1e-4, rtol=1e-4))
    assert bool(jnp.allclose(y_b.astype(jnp.float32), ref_b,
                             atol=5e-2, rtol=5e-2))
    assert bool(jnp.allclose(y_c, ref_c, atol=1e-3, rtol=1e-3))
    print("KERNEL_OK")
</pallas_src>

<mosaic_0001>
module attributes {stable_mosaic.version = 11 : i64} {
  func.func @_resident_kernel(%arg0: i32, %arg1: memref<6x16xf32, #tpu.memory_space<vmem>>, %arg2: memref<6x16xf32, #tpu.memory_space<vmem>>) attributes {dimension_semantics = [#tpu.dimension_semantics<parallel>], iteration_bounds = array<i64: 1>, scalar_prefetch = 0 : i64, scratch_operands = 0 : i64, tpu.core_type = #tpu.core_type<tc>, window_params = [{transform_indices = @transform_0, window_bounds = array<i64: 6, 16>}, {transform_indices = @transform_1, window_bounds = array<i64: 6, 16>}]} {
    %c0 = arith.constant 0 : index
    %c0_0 = arith.constant 0 : index
    %0 = vector.load %arg1[%c0, %c0_0] : memref<6x16xf32, #tpu.memory_space<vmem>>, vector<6x16xf32>
    %cst = arith.constant dense<0.000000e+00> : vector<6xf32>
    %1 = vector.multi_reduction <add>, %0, %cst [1] : vector<6x16xf32> to vector<6xf32>
    %2 = vector.shape_cast %1 : vector<6xf32> to vector<6x1xf32>
    %cst_1 = arith.constant 1.600000e+01 : f32
    %3 = vector.broadcast %cst_1 : f32 to vector<6x1xf32>
    %4 = arith.divf %2, %3 : vector<6x1xf32>
    %5 = vector.broadcast %4 : vector<6x1xf32> to vector<6x16xf32>
    %6 = arith.subf %0, %5 : vector<6x16xf32>
    %7 = arith.mulf %6, %6 : vector<6x16xf32>
    %cst_2 = arith.constant dense<0.000000e+00> : vector<6xf32>
    %8 = vector.multi_reduction <add>, %7, %cst_2 [1] : vector<6x16xf32> to vector<6xf32>
    %9 = vector.shape_cast %8 : vector<6xf32> to vector<6x1xf32>
    %cst_3 = arith.constant 1.600000e+01 : f32
    %10 = vector.broadcast %cst_3 : f32 to vector<6x1xf32>
    %11 = arith.divf %9, %10 : vector<6x1xf32>
    %cst_4 = arith.constant 9.99999974E-6 : f32
    %12 = vector.broadcast %cst_4 : f32 to vector<6x1xf32>
    %13 = arith.addf %11, %12 : vector<6x1xf32>
    %14 = math.rsqrt %13 : vector<6x1xf32>
    %15 = vector.broadcast %14 : vector<6x1xf32> to vector<6x16xf32>
    %16 = arith.mulf %6, %15 : vector<6x16xf32>
    %c0_5 = arith.constant 0 : index
    %c0_6 = arith.constant 0 : index
    %17 = vector.load %arg2[%c0_5, %c0_6] : memref<6x16xf32, #tpu.memory_space<vmem>>, vector<6x16xf32>
    tpu.vector_store %arg2[%c0_5, %c0_6], %16 {strides = array<i32>} : memref<6x16xf32, #tpu.memory_space<vmem>>, vector<6x16xf32>,
    return
  }
  func.func @transform_0(%arg0: i32) -> (i32, i32) {
    %c0_i32 = arith.constant 0 : i32
    %c0_i32_0 = arith.constant 0 : i32
    return %arg0, %c0_i32 : i32, i32
  }
  func.func @transform_1(%arg0: i32) -> (i32, i32) {
    %c0_i32 = arith.constant 0 : i32
    %c0_i32_0 = arith.constant 0 : i32
    return %arg0, %c0_i32 : i32, i32
  }
}

</mosaic_0001>

<bundles_post_ra>
// kernel: instance_norm1d.1
= control target key start
LH: loop header
LB: loop body
LE: loop exit
PB: predicated region body
PF: predicated region fallthrough
CT: control target
= control target key end

     0   :  { %vm9_vm0 = vcmask 128000   ;;  %v49_v2 = vmov 16.0   ;;  %s69_s0 = inlined_call_operand.vmem [shape: f32[6,16], index: 0, kind: input, shape index: {}]   ;;  %s70_s1 = inlined_call_operand.vmem [shape: f32[6,16], index: 1, kind: output, shape index: {}]  }
   0x1   :  { %v8_v0 = vld [vmem:[%s69_s0] sm:$0x3f]  ;;  %45 = vrcp.f32 %v49_v2 }
   0x2   :  { %v10_v1 = vsel %vm9_vm0, %v8_v0, 0.0 }
   0x3   :  { %11 = vadd.xlane.f32.xlu0 %v10_v1 }
   0x7   :  { %v46_v3 = vpop.eup %45 }
   0x8   :  { %v14_v4 = vmul.f32 16.0, %v46_v3  ;;  %vm18_vm1 = vweird.f32 %v46_v3 }
   0xa   :  { %v15_v5 = vsub.f32 1.0, %v14_v4 }
   0xc   :  { %v16_v6 = vmul.f32 %v46_v3, %v15_v5 }
   0xe   :  { %v17_v7 = vadd.f32 %v46_v3, %v16_v6 }
  0x10   :  { %v19_v8 = vsel %vm18_vm1, %v46_v3, %v17_v7 }
  0x76   :  { %v12_v9 = vpop.xlane.xlu0 %11 }
  0x77   :  { %v20_v10 = vmul.f32 %v19_v8, %v12_v9 }
  0x79   :  { %v21_v11 = vsub.f32 %v8_v0, %v20_v10 }
  0x7b   :  { %v22_v12 = vmul.f32 %v21_v11, %v21_v11 }
  0x7d   :  { %v23_v13 = vsel %vm9_vm0, %v22_v12, 0.0 }
  0x7e   :  { %24 = vadd.xlane.f32.xlu0 %v23_v13 }
  0xf1   :  { %v25_v14 = vpop.xlane.xlu0 %24 }
  0xf2   :  { %v26_v15 = vmul.f32 %v25_v14, %v19_v8 }
  0xf4   :  { %v27_v16 = vadd.f32 1e-05, %v26_v15 }
  0xf6   :  { %47 = vrsqrt.f32 %v27_v16  ;;  %vm34_vm3 = vweird.f32 %v27_v16 }
  0xfc   :  { %v48_v17 = vpop.eup %47 }
  0xfd   :  { %v29_v18 = vmul.f32 %v48_v17, %v27_v16  ;;  %vm35_vm2 = vweird.f32 %v48_v17 }
  0xfe   :  { %vm36_vm4 = vmor %vm34_vm3, %vm35_vm2 }
  0xff   :  { %v30_v19 = vmul.f32 %v48_v17, %v29_v18 }
 0x101   :  { %v31_v20 = vmul.f32 0.5, %v30_v19 }
 0x103   :  { %v32_v21 = vsub.f32 1.5, %v31_v20 }
 0x105   :  { %v33_v22 = vmul.f32 %v48_v17, %v32_v21 }
 0x107   :  { %v37_v23 = vsel %vm36_vm4, %v48_v17, %v33_v22 }
 0x108   :  { %v38_v24 = vmul.f32 %v37_v23, %v21_v11 }
 0x10a   :  { %39 = vst.msk [vmem:[%s70_s1] sm:$0x3f] %vm9_vm0, %v38_v24 }

</bundles_post_ra>
